<compile_context>
chip_gen: v7x
topology: tpu7x:2x2x1
jax: 0.10.0
libtpu: 0.0.40
codegen_flags: <defaults>
</compile_context>

<pallas_src>
import math
from typing import NamedTuple

import jax
import jax.numpy as jnp
from jax import lax
from jax.experimental import pallas as pl
from jax.experimental.pallas import tpu as pltpu


def _round_up(x, m):
    return ((x + m - 1) // m) * m


class HeaderParams(NamedTuple):
    w_t: jax.Array        # (K_pad, nc_pad)  pre-transposed, zero-padded, compute_dtype
    bias: jax.Array       # (1, nc_pad)      f32, zero-padded
    num_classes: int      # nc (un-padded)
    in_features: int      # K  (un-padded)
    tk: int               # K tile the weight was padded for


def prepare_params(weight, bias, *, compute_dtype=jnp.bfloat16, tk=1024):
    """One-time prep: cast to compute_dtype, transpose to (K, nc), pad nc -> 128-multiple
    and K -> tk-multiple.  Done once at init so per-call HBM traffic is one weight read."""
    nc, K = weight.shape
    nc_pad = _round_up(nc, 128)
    if K <= tk:
        tk = K                               # single K step; full-extent block is exempt
    else:                                    # from the 128-lane divisibility rule
        tk = max(128, (tk // 128) * 128)
    K_pad = _round_up(K, tk)
    w_t = weight.astype(compute_dtype).T     # (K, nc): canonical [M,K]x[K,N] MXU layout
    w_t = jnp.pad(w_t, ((0, K_pad - K), (0, nc_pad - nc)))
    b = jnp.pad(bias.astype(jnp.float32), (0, nc_pad - nc)).reshape(1, nc_pad)
    return HeaderParams(w_t, b, int(nc), int(K), int(tk))


def _make_linear_kernel(K, tk, ragged_k, compute_dtype):
    """o[i, j] = sum_k x[i, k] @ w[k, j] + b[j], accumulated over the K grid axis."""

    def kernel(x_ref, w_ref, b_ref, o_ref, acc_ref):
        k = pl.program_id(2)

        @pl.when(k == 0)
        def _():
            acc_ref[...] = jnp.zeros_like(acc_ref)

        x = x_ref[...]
        if ragged_k:
            # Zero the columns past K on the (partial) boundary K tile; the matching
            # weight rows are already zero-padded, so the product contributes nothing.
            col = k * tk + lax.broadcasted_iota(jnp.int32, x.shape, 1)
            x = jnp.where(col < K, x, jnp.zeros_like(x))

        # Cast x on the VPU (hidden under DMA/MXU); canonical contraction on the MXU.
        acc_ref[...] += jnp.dot(
            x.astype(compute_dtype), w_ref[...], preferred_element_type=jnp.float32
        )

        @pl.when(k == pl.num_programs(2) - 1)
        def _():
            # Fused epilogue: bias add + output-dtype cast, single HBM write.
            o_ref[...] = (acc_ref[...] + b_ref[...]).astype(o_ref.dtype)

    return kernel


def resnet_header_forward(x_nchw, params: HeaderParams, *, tm_max=512, tn=512):
    """x_nchw: (N, C, H, W) f32/bf16; params: from prepare_params."""
    N = x_nchw.shape[0]
    K = math.prod(x_nchw.shape[1:])
    assert K == params.in_features, "input feature size must match the prepared weight"
    K_pad, nc_pad = params.w_t.shape
    tk = params.tk
    nc = params.num_classes
    out_dtype = x_nchw.dtype

    # AdaptiveAvgPool2d((None, None)) == identity; Flatten == row-major NCHW reshape.
    # Free view: x stays in its native dtype in HBM, no wrapper cast/pad pass.
    x2 = x_nchw.reshape(N, K)

    # Output-column tile: multiple of 128 that divides nc_pad (lane-dense stores).
    tn = max(128, min((tn // 128) * 128, nc_pad))
    while nc_pad % tn:
        tn -= 128

    # Batch tile: cover the whole batch when it fits (weight read exactly once);
    # a full-extent block (tm == N) is exempt from the 8-sublane divisibility rule.
    if N <= tm_max:
        tm = N
    else:
        tm = (tm_max // 8) * 8

    # VMEM budget (double-buffered x/w/bias/out tiles + f32 accumulator scratch).
    def vmem_bytes(tm_):
        x_b = 2 * tm_ * tk * x2.dtype.itemsize
        w_b = 2 * tk * tn * params.w_t.dtype.itemsize
        b_b = 2 * 8 * tn * 4
        o_b = 2 * tm_ * tn * jnp.dtype(out_dtype).itemsize
        acc = tm_ * tn * 4
        return x_b + w_b + b_b + o_b + acc

    try:
        cap = int(pltpu.get_tpu_info().vmem_capacity_bytes * 0.8)
    except Exception:
        cap = 48 << 20  # safe on v5e/v6e (128 MiB) and v7x (64 MiB)
    while tm > 8 and vmem_bytes(tm) > cap:
        tm = max(8, _round_up(tm // 2, 8))
    vmem_limit = int(min(max(vmem_bytes(tm) + (4 << 20), 32 << 20), cap))

    grid = (pl.cdiv(N, tm), nc_pad // tn, K_pad // tk)  # reduction axis last

    kernel = _make_linear_kernel(K, tk, K_pad != K, params.w_t.dtype)

    out = pl.pallas_call(
        kernel,
        out_shape=jax.ShapeDtypeStruct((N, nc_pad), out_dtype),
        grid_spec=pltpu.PrefetchScalarGridSpec(
            num_scalar_prefetch=0,
            grid=grid,
            in_specs=[
                pl.BlockSpec((tm, tk), lambda i, j, k: (i, k)),  # x tile (native dtype)
                pl.BlockSpec((tk, tn), lambda i, j, k: (k, j)),  # weight, pre-transposed
                pl.BlockSpec((1, tn), lambda i, j, k: (0, j)),   # bias row
            ],
            out_specs=pl.BlockSpec((tm, tn), lambda i, j, k: (i, j)),
            scratch_shapes=[pltpu.VMEM((tm, tn), jnp.float32)],
        ),
        compiler_params=pltpu.CompilerParams(
            dimension_semantics=("parallel", "parallel", "arbitrary"),
            vmem_limit_bytes=vmem_limit,
        ),
    )(x2, params.w_t, params.bias)

    # Drop the padded classes (tiny fused slice); bias/cast already done in-kernel.
    return out[:, :nc]


if __name__ == "__main__":
    # Small shapes consistent with the module: in_channels = C*H*W.
    N, C, H, W = 2, 4, 16, 16
    num_classes = 4
    K = C * H * W  # 1024

    key = jax.random.PRNGKey(0)
    kx, kw, kb = jax.random.split(key, 3)

    x = jax.random.normal(kx, (N, C, H, W), dtype=jnp.float32)
    # PyTorch-shaped Linear params: weight (out, in), bias (out,).
    weight = jax.random.normal(kw, (num_classes, K), dtype=jnp.float32) * 0.02
    bias = jax.random.normal(kb, (num_classes,), dtype=jnp.float32) * 0.1

    params = prepare_params(weight, bias, tk=1024)

    y = resnet_header_forward(x, params)
    y = jax.block_until_ready(y)

    # Reference (same semantics as the PyTorch module), with matching bf16 rounding.
    x_bf = x.reshape(N, K).astype(jnp.bfloat16).astype(jnp.float32)
    w_bf = weight.astype(jnp.bfloat16).astype(jnp.float32)
    y_ref = x_bf @ w_bf.T + bias

    assert y.shape == (N, num_classes)
    assert y.dtype == x.dtype
    assert jnp.allclose(y, y_ref, atol=1e-2, rtol=1e-2)

    print("KERNEL_OK")
</pallas_src>

<mosaic_0001>
module attributes {stable_mosaic.version = 11 : i64} {
  func.func @kernel(%arg0: i32, %arg1: i32, %arg2: i32, %arg3: memref<2x1024xf32, #tpu.memory_space<vmem>>, %arg4: memref<1024x128xbf16, #tpu.memory_space<vmem>>, %arg5: memref<1x128xf32, #tpu.memory_space<vmem>>, %arg6: memref<2x128xf32, #tpu.memory_space<vmem>>, %arg7: memref<2x128xf32, #tpu.memory_space<vmem>>) attributes {dimension_semantics = [#tpu.dimension_semantics<parallel>, #tpu.dimension_semantics<parallel>, #tpu.dimension_semantics<arbitrary>], iteration_bounds = array<i64: 1, 1, 1>, scalar_prefetch = 0 : i64, scratch_operands = 1 : i64, tpu.core_type = #tpu.core_type<tc>, window_params = [{transform_indices = @transform_0, window_bounds = array<i64: 2, 1024>}, {transform_indices = @transform_1, window_bounds = array<i64: 1024, 128>}, {transform_indices = @transform_2, window_bounds = array<i64: 1, 128>}, {transform_indices = @transform_3, window_bounds = array<i64: 2, 128>}]} {
    %c0_i32 = arith.constant 0 : i32
    %0 = arith.cmpi eq, %arg2, %c0_i32 : i32
    %1 = arith.extui %0 : i1 to i32
    %c0_i32_0 = arith.constant 0 : i32
    %2 = arith.cmpi ne, %1, %c0_i32_0 : i32
    scf.if %2 {
      %cst_10 = arith.constant 0.000000e+00 : f32
      %13 = vector.broadcast %cst_10 : f32 to vector<2x128xf32>
      %c0_11 = arith.constant 0 : index
      %c0_12 = arith.constant 0 : index
      %14 = vector.load %arg7[%c0_11, %c0_12] : memref<2x128xf32, #tpu.memory_space<vmem>>, vector<2x128xf32>
      tpu.vector_store %arg7[%c0_11, %c0_12], %13 {strides = array<i32>} : memref<2x128xf32, #tpu.memory_space<vmem>>, vector<2x128xf32>,
    } else {
    }
    %c0 = arith.constant 0 : index
    %c0_1 = arith.constant 0 : index
    %3 = vector.load %arg3[%c0, %c0_1] : memref<2x1024xf32, #tpu.memory_space<vmem>>, vector<2x1024xf32>
    %c0_2 = arith.constant 0 : index
    %c0_3 = arith.constant 0 : index
    %4 = vector.load %arg7[%c0_2, %c0_3] : memref<2x128xf32, #tpu.memory_space<vmem>>, vector<2x128xf32>
    %5 = arith.truncf %3 : vector<2x1024xf32> to vector<2x1024xbf16>
    %c0_4 = arith.constant 0 : index
    %c0_5 = arith.constant 0 : index
    %6 = vector.load %arg4[%c0_4, %c0_5] : memref<1024x128xbf16, #tpu.memory_space<vmem>>, vector<1024x128xbf16>
    %cst = arith.constant dense<0.000000e+00> : vector<2x128xf32>
    %7 = tpu.matmul %5, %6, %cst {dimension_numbers = #tpu.dot_dimension_numbers<[1], [0], [0], [1], [0, 0, 1, 1], [], []>} : vector<2x1024xbf16>, vector<1024x128xbf16>, vector<2x128xf32> -> vector<2x128xf32>
    %8 = arith.addf %4, %7 : vector<2x128xf32>
    %c0_6 = arith.constant 0 : index
    %c0_7 = arith.constant 0 : index
    %9 = vector.load %arg7[%c0_6, %c0_7] : memref<2x128xf32, #tpu.memory_space<vmem>>, vector<2x128xf32>
    tpu.vector_store %arg7[%c0_6, %c0_7], %8 {strides = array<i32>} : memref<2x128xf32, #tpu.memory_space<vmem>>, vector<2x128xf32>,
    %c0_i32_8 = arith.constant 0 : i32
    %10 = arith.cmpi eq, %arg2, %c0_i32_8 : i32
    %11 = arith.extui %10 : i1 to i32
    %c0_i32_9 = arith.constant 0 : i32
    %12 = arith.cmpi ne, %11, %c0_i32_9 : i32
    scf.if %12 {
      %c0_10 = arith.constant 0 : index
      %c0_11 = arith.constant 0 : index
      %13 = vector.load %arg7[%c0_10, %c0_11] : memref<2x128xf32, #tpu.memory_space<vmem>>, vector<2x128xf32>
      %c0_12 = arith.constant 0 : index
      %c0_13 = arith.constant 0 : index
      %14 = vector.load %arg5[%c0_12, %c0_13] : memref<1x128xf32, #tpu.memory_space<vmem>>, vector<1x128xf32>
      %15 = vector.broadcast %14 : vector<1x128xf32> to vector<2x128xf32>
      %16 = arith.addf %13, %15 : vector<2x128xf32>
      %c0_14 = arith.constant 0 : index
      %c0_15 = arith.constant 0 : index
      %17 = vector.load %arg6[%c0_14, %c0_15] : memref<2x128xf32, #tpu.memory_space<vmem>>, vector<2x128xf32>
      tpu.vector_store %arg6[%c0_14, %c0_15], %16 {strides = array<i32>} : memref<2x128xf32, #tpu.memory_space<vmem>>, vector<2x128xf32>,
    } else {
    }
    return
  }
  func.func @transform_0(%arg0: i32, %arg1: i32, %arg2: i32) -> (i32, i32) {
    %c0_i32 = arith.constant 0 : i32
    return %arg0, %arg2 : i32, i32
  }
  func.func @transform_1(%arg0: i32, %arg1: i32, %arg2: i32) -> (i32, i32) {
    %c0_i32 = arith.constant 0 : i32
    return %arg2, %arg1 : i32, i32
  }
  func.func @transform_2(%arg0: i32, %arg1: i32, %arg2: i32) -> (i32, i32) {
    %c0_i32 = arith.constant 0 : i32
    %c0_i32_0 = arith.constant 0 : i32
    return %c0_i32, %arg1 : i32, i32
  }
  func.func @transform_3(%arg0: i32, %arg1: i32, %arg2: i32) -> (i32, i32) {
    %c0_i32 = arith.constant 0 : i32
    return %arg0, %arg1 : i32, i32
  }
}

</mosaic_0001>

<bundles_post_ra>
// kernel: tpu_custom_call.1
= control target key start
LH: loop header
LB: loop body
LE: loop exit
PB: predicated region body
PF: predicated region fallthrough
CT: control target
= control target key end

     0   :  { %8 = vsyncpa [#allocation4], 0  ;;  %s1182_s0 = inlined_call_operand.hbm [shape: f32[2,1024], index: 0, kind: input, shape index: {}]   ;;  %s1183_s1 = inlined_call_operand.hbm [shape: bf16[1024,128], index: 1, kind: input, shape index: {}]   ;;  %s1184_s2 = inlined_call_operand.vmem [shape: f32[1,128], index: 2, kind: input, shape index: {}]   ;;  %s1185_s3 = inlined_call_operand.hbm [shape: f32[2,128], index: 3, kind: output, shape index: {}]  }
   0x1   :  { %9 = vsyncpa [#allocation7], 0 }
   0x2   :  { %10 = vsyncpa [#allocation5], 0  ;;  %s1103_s12 = smov [#allocation3]   ;;  %s1104_s14 = smov [#allocation6]  }
   0x3   :  { %s17_s13 = sshll.u32 %s1103_s12, 4  ;;  %s26_s15 = sshll.u32 %s1104_s14, 4  ;;  %s18_s13 = int_to_ptr.vmem [resolvable:$true] %s17_s13  ;;  %s1130_s15 = int_to_ptr.vmem [resolvable:$true] %s26_s15 }
   0x4   :  { %s1031_s18 = scalar_lea.hbm %s1182_s0, 256 }
   0x5   :  { %p1032_p0 = scmp.ne.s32.totalorder %s1182_s0, %s1031_s18  ;;  %p1035_p1 = scmp.lt.u32.totalorder %s1031_s18, %s1182_s0 }
   0x7   :  { %p1037_p2 = pnand %p1035_p1, %p1032_p0 }
   0x9   :  { %1040 = shalt.err (!%p1037_p2)
}
   0xa   :  { %s1041_s23 = scalar_lea.vmem %s18_s13, 256  ;;  %p1046_p4 = scmp.lt.s32.totalorder %s18_s13, %s18_s13 }
   0xb   :  { %p1042_p3 = scmp.ne.s32.totalorder %s18_s13, %s1041_s23  ;;  %p1047_p5 = scmp.lt.s32.totalorder %s1041_s23, %s1041_s23 }
   0xd   :  { %p1048_p6 = por %p1047_p5, %p1046_p4 }
   0xf   :  { %p1049_p7 = pnand %p1048_p6, %p1042_p3 }
  0x11   :  { %1052 = shalt.err (!%p1049_p7)
}
  0x12   :  { %20 = dma.hbm_to_vmem [thread:$0]  %s1182_s0, 256, %s18_s13, [#allocation4]  }
  0x13   :  { %s1053_s28 = scalar_lea.hbm %s1183_s1, 8192 }
  0x14   :  { %p1054_p8 = scmp.ne.s32.totalorder %s1183_s1, %s1053_s28  ;;  %p1057_p9 = scmp.lt.u32.totalorder %s1053_s28, %s1183_s1 }
  0x16   :  { %p1059_p10 = pnand %p1057_p9, %p1054_p8 }
  0x18   :  { %1062 = shalt.err (!%p1059_p10)
}
  0x19   :  { %s1063_s6 = scalar_lea.vmem %s1130_s15, 8192  ;;  %p1068_p12 = scmp.lt.s32.totalorder %s1130_s15, %s1130_s15 }
  0x1a   :  { %p1064_p11 = scmp.ne.s32.totalorder %s1130_s15, %s1063_s6  ;;  %p1069_p13 = scmp.lt.s32.totalorder %s1063_s6, %s1063_s6 }
  0x1c   :  { %p1070_p0 = por %p1069_p13, %p1068_p12 }
  0x1e   :  { %p1071_p1 = pnand %p1070_p0, %p1064_p11 }
  0x20   :  { %1074 = shalt.err (!%p1071_p1)
}
  0x21   :  { %s1105_s0 = smov 64   ;;  %s1106_s7 = smov 4  }
  0x22   :  { %32 = dma.hbm_to_vmem [thread:$0]  %s1183_s1, 8192, %s1130_s15, [#allocation7], %s1105_s0, %s1105_s0, %s1106_s7  }
  0x23   :  { %1097 = dma.done.wait [#allocation4], 256  }
  0x24   :  { %1098 = vsyncadd [#allocation4], 4294967040 }
  0x25   :  { %1099 = dma.done.wait [#allocation7], 8192  }
  0x26   :  { %1100 = vsyncadd [#allocation7], 4294959104  ;;  %v965_v0 = vld [vmem:[#allocation6 + $0x40] sm:$0xff]   ;;  %v969_v4 = vld [vmem:[#allocation6 + $0x48] sm:$0xff]   ;;  %v1107_v22 = vmov 1983009808   ;;  %v56_v24 = vlaneseq }
  0x27   :  { %v966_v1 = vld [vmem:[#allocation6 + $0xc0] sm:$0xff]   ;;  %870 = vmatprep.subr.bf16.mxu0 %v965_v0  ;;  %v970_v5 = vld [vmem:[#allocation6 + $0xc8] sm:$0xff]   ;;  %v973_v8 = vld [vmem:[#allocation6 + $0x50] sm:$0xff]   ;;  %v54_v23 = vunpack.c.l.s4 %v1107_v22  ;;  %s1109_s11 = smov [#allocation8]  }
  0x28   :  { %v967_v2 = vld [vmem:[#allocation6] sm:$0xff]   ;;  %892 = vmatprep.subr.bf16.mxu1 %v966_v1  ;;  %v971_v6 = vld [vmem:[#allocation6 + $0x8] sm:$0xff]   ;;  %v974_v9 = vld [vmem:[#allocation6 + $0xd0] sm:$0xff]   ;;  %v57_v30 = vshrl.u32 %v56_v24, 7  ;;  %s795_s12 = sshll.u32 %s1109_s11, 4  ;;  %s796_s12 = int_to_ptr.vmem [resolvable:$true] %s795_s12 }
  0x29   :  { %v968_v3 = vld [vmem:[#allocation6 + $0x80] sm:$0xff]   ;;  %871 = vmatpush3.bf16.msra.mxu0 %v967_v2  ;;  %v972_v7 = vld [vmem:[#allocation6 + $0x88] sm:$0xff]   ;;  %v975_v10 = vld [vmem:[#allocation6 + $0x10] sm:$0xff]   ;;  %v55_v29 = vunpack.c.0.s8 %v54_v23  ;;  %s1075_s13 = scalar_lea.vmem %s796_s12, 32  ;;  %p1080_p3 = scmp.lt.s32.totalorder %s796_s12, %s796_s12 }
  0x2a   :  { %893 = vmatpush3.bf16.msra.mxu1 %v968_v3  ;;  %872 = vmatprep.subr.bf16.mxu0 %v969_v4  ;;  %v976_v11 = vld [vmem:[#allocation6 + $0x90] sm:$0xff]   ;;  %v977_v12 = vld [vmem:[#allocation6 + $0x58] sm:$0xff]   ;;  %v981_v16 = vld [vmem:[#allocation6 + $0x60] sm:$0xff]   ;;  %p1076_p2 = scmp.ne.s32.totalorder %s796_s12, %s1075_s13  ;;  %p1081_p4 = scmp.lt.s32.totalorder %s1075_s13, %s1075_s13 }
  0x2b   :  { %894 = vmatprep.subr.bf16.mxu1 %v970_v5  ;;  %v978_v13 = vld [vmem:[#allocation6 + $0xd8] sm:$0xff]   ;;  %v982_v17 = vld [vmem:[#allocation6 + $0xe0] sm:$0xff]   ;;  %v985_v20 = vld [vmem:[#allocation6 + $0x68] sm:$0xff]   ;;  %v1161_v35 = vsub.s32 %v55_v29, %v57_v30 }
  0x2c   :  { %v979_v14 = vld [vmem:[#allocation6 + $0x18] sm:$0xff]   ;;  %v983_v18 = vld [vmem:[#allocation6 + $0x20] sm:$0xff]   ;;  %v986_v21 = vld [vmem:[#allocation6 + $0xe8] sm:$0xff]   ;;  %p1082_p5 = por %p1081_p4, %p1080_p3 }
  0x2d   :  { %873 = vmatpush3.bf16.msra.mxu0 %v971_v6  ;;  %v980_v15 = vld [vmem:[#allocation6 + $0x98] sm:$0xff]   ;;  %v984_v19 = vld [vmem:[#allocation6 + $0xa0] sm:$0xff]   ;;  %v987_v25 = vld [vmem:[#allocation6 + $0x28] sm:$0xff]  }
  0x2e   :  { %895 = vmatpush3.bf16.msra.mxu1 %v972_v7  ;;  %874 = vmatprep.subr.bf16.mxu0 %v973_v8  ;;  %v988_v26 = vld [vmem:[#allocation6 + $0xa8] sm:$0xff]   ;;  %v989_v27 = vld [vmem:[#allocation6 + $0x70] sm:$0xff]   ;;  %v993_v33 = vld [vmem:[#allocation6 + $0x78] sm:$0xff]   ;;  %p1083_p6 = pnand %p1082_p5, %p1076_p2 }
  0x2f   :  { %896 = vmatprep.subr.bf16.mxu1 %v974_v9  ;;  %v990_v28 = vld [vmem:[#allocation6 + $0xf0] sm:$0xff]   ;;  %v994_v34 = vld [vmem:[#allocation6 + $0xf8] sm:$0xff]   ;;  %v998_v41 = vld [vmem:[#allocation6 + $0x140] sm:$0xff]  }
  0x30   :  { %v991_v31 = vld [vmem:[#allocation6 + $0x30] sm:$0xff]   ;;  %v995_v36 = vld [vmem:[#allocation6 + $0x38] sm:$0xff]   ;;  %v999_v42 = vld [vmem:[#allocation6 + $0x1c0] sm:$0xff]  }
  0x31   :  { %875 = vmatpush3.bf16.msra.mxu0 %v975_v10  ;;  %v992_v32 = vld [vmem:[#allocation6 + $0xb0] sm:$0xff]   ;;  %v996_v37 = vld [vmem:[#allocation6 + $0xb8] sm:$0xff]   ;;  %v1000_v48 = vld [vmem:[#allocation6 + $0x100] sm:$0xff]  }
  0x32   :  { %897 = vmatpush3.bf16.msra.mxu1 %v976_v11  ;;  %876 = vmatprep.subr.bf16.mxu0 %v977_v12  ;;  %v47_v38 = vld [vmem:[#allocation3] sm:$0xff]  ;;  %v1002_v50 = vld [vmem:[#allocation6 + $0x148] sm:$0xff]   ;;  %v1001_v52 = vld [vmem:[#allocation6 + $0x180] sm:$0xff]  }
  0x33   :  { %898 = vmatprep.subr.bf16.mxu1 %v978_v13  ;;  %v59_v39 = vrot.slane %v47_v38, %v1161_v35  ;;  %v52_v40 = vcombine.high %v47_v38, %v47_v38  ;;  %v1003_v53 = vld [vmem:[#allocation6 + $0x1c8] sm:$0xff]   ;;  %v1006_v55 = vld [vmem:[#allocation6 + $0x150] sm:$0xff]   ;;  %v1010_v59 = vld [vmem:[#allocation6 + $0x158] sm:$0xff]  }
  0x34   :  { %v1004_v54 = vld [vmem:[#allocation6 + $0x108] sm:$0xff]   ;;  %v1007_v57 = vld [vmem:[#allocation6 + $0x1d0] sm:$0xff]   ;;  %v1011_v61 = vld [vmem:[#allocation6 + $0x1d8] sm:$0xff]  }
  0x35   :  { %877 = vmatpush3.bf16.msra.mxu0 %v979_v14  ;;  %v67_v43 = vcombine.high %v59_v39, %v59_v39  ;;  %v66_v44 = vrot.slane %v52_v40, %v1161_v35  ;;  %v94_v45 = vpack.c.bf16 %v59_v39, %v59_v39  ;;  %v1005_v56 = vld [vmem:[#allocation6 + $0x188] sm:$0xff]   ;;  %v1008_v58 = vld [vmem:[#allocation6 + $0x110] sm:$0xff]   ;;  %v1012_v62 = vld [vmem:[#allocation6 + $0x118] sm:$0xff]  }
  0x36   :  { %899 = vmatpush3.bf16.msra.mxu1 %v980_v15  ;;  %878 = vmatprep.subr.bf16.mxu0 %v981_v16  ;;  %v1009_v60 = vld [vmem:[#allocation6 + $0x190] sm:$0xff]   ;;  %v1014_v63 = vld [vmem:[#allocation6 + $0x160] sm:$0xff]   ;;  %v1013_v0 = vld [vmem:[#allocation6 + $0x198] sm:$0xff]  }
  0x37   :  { %900 = vmatprep.subr.bf16.mxu1 %v982_v17  ;;  %v95_v46 = vpack.c.bf16 %v67_v43, %v67_v43  ;;  %v68_v47 = vcombine.high %v66_v44, %v66_v44  ;;  %v96_v49 = vpack.c.bf16 %v66_v44, %v66_v44  ;;  %v1015_v1 = vld [vmem:[#allocation6 + $0x1e0] sm:$0xff]   ;;  %v1018_v3 = vld [vmem:[#allocation6 + $0x168] sm:$0xff]   ;;  %v1022_v7 = vld [vmem:[#allocation6 + $0x170] sm:$0xff]  }
  0x38   :  { %v1016_v2 = vld [vmem:[#allocation6 + $0x120] sm:$0xff]   ;;  %v1019_v5 = vld [vmem:[#allocation6 + $0x1e8] sm:$0xff]   ;;  %v1023_v9 = vld [vmem:[#allocation6 + $0x1f0] sm:$0xff]  }
  0x39   :  { %879 = vmatpush3.bf16.msra.mxu0 %v983_v18  ;;  %646 = vmatprep.mubr.bf16.mxu0 %v95_v46  ;;  %v97_v51 = vpack.c.bf16 %v68_v47, %v68_v47  ;;  %v1017_v4 = vld [vmem:[#allocation6 + $0x1a0] sm:$0xff]   ;;  %v1020_v6 = vld [vmem:[#allocation6 + $0x128] sm:$0xff]   ;;  %v1024_v10 = vld [vmem:[#allocation6 + $0x130] sm:$0xff]  }
  0x3a   :  { %901 = vmatpush3.bf16.msra.mxu1 %v984_v19  ;;  %880 = vmatprep.subr.bf16.mxu0 %v985_v20  ;;  %v1021_v8 = vld [vmem:[#allocation6 + $0x1a8] sm:$0xff]   ;;  %v1026_v11 = vld [vmem:[#allocation6 + $0x178] sm:$0xff]   ;;  %v1025_v12 = vld [vmem:[#allocation6 + $0x1b0] sm:$0xff]  }
  0x3b   :  { %902 = vmatprep.subr.bf16.mxu1 %v986_v21  ;;  %686 = vmatprep.mubr.bf16.mxu1 %v97_v51  ;;  %v1027_v13 = vld [vmem:[#allocation6 + $0x1f8] sm:$0xff]  }
  0x3c   :  { %v48_v14 = vld [vmem:[#allocation3 + $0x8] sm:$0xff] }
  0x3d   :  { %881 = vmatpush3.bf16.msra.mxu0 %v987_v25  ;;  %v1028_v15 = vld [vmem:[#allocation6 + $0x138] sm:$0xff]   ;;  %v76_v16 = vrot.slane %v48_v14, %v1161_v35  ;;  %v69_v17 = vcombine.high %v48_v14, %v48_v14 }
  0x3e   :  { %903 = vmatpush3.bf16.msra.mxu1 %v988_v26  ;;  %882 = vmatprep.subr.bf16.mxu0 %v989_v27  ;;  %v1029_v18 = vld [vmem:[#allocation6 + $0x1b8] sm:$0xff]   ;;  %v1108_v26 = vmov 0.0  }
  0x3f   :  { %904 = vmatprep.subr.bf16.mxu1 %v990_v28  ;;  %v84_v19 = vcombine.high %v76_v16, %v76_v16  ;;  %v83_v20 = vrot.slane %v69_v17, %v1161_v35  ;;  %v98_v21 = vpack.c.bf16 %v76_v16, %v76_v16  ;;  %46 = vst [vmem:[#allocation2] sm:$0x3] %v1108_v26 }
  0x41   :  { %883 = vmatpush3.bf16.msra.mxu0 %v991_v31  ;;  %v99_v22 = vpack.c.bf16 %v84_v19, %v84_v19  ;;  %v85_v23 = vcombine.high %v83_v20, %v83_v20  ;;  %v100_v24 = vpack.c.bf16 %v83_v20, %v83_v20 }
  0x42   :  { %905 = vmatpush3.bf16.msra.mxu1 %v992_v32  ;;  %884 = vmatprep.subr.bf16.mxu0 %v993_v33 }
  0x43   :  { %906 = vmatprep.subr.bf16.mxu1 %v994_v34  ;;  %v101_v25 = vpack.c.bf16 %v85_v23, %v85_v23 }
  0x45   :  { %885 = vmatpush3.bf16.msra.mxu0 %v995_v36 }
  0x46   :  { %907 = vmatpush3.bf16.msra.mxu1 %v996_v37  ;;  %914 = vmatprep.subr.bf16.mxu0 %v998_v41 }
  0x47   :  { %936 = vmatprep.subr.bf16.mxu1 %v999_v42 }
  0x48   :  { %647 = vmatmul.mubr.bf16.vlgmr.msra.gmra.mrb[0].mxu0 %v94_v45 }
  0x49   :  { %915 = vmatpush3.bf16.msra.mxu0 %v1000_v48  ;;  %687 = vmatmul.mubr.bf16.vlgmr.msra.gmra.mrb[0].mxu1 %v96_v49  ;;  %v49_v48 = vld [vmem:[#allocation2] sm:$0x3] }
  0x4a   :  { %916 = vmatprep.subr.bf16.mxu0 %v1002_v50  ;;  %937 = vmatpush3.bf16.msra.mxu1 %v1001_v52  ;;  %v869_v52 = vld [vmem:[%s1184_s2] ss:$0 sm:$0xff] }
  0x4b   :  { %938 = vmatprep.subr.bf16.mxu1 %v1003_v53  ;;  %726 = vmatprep.mubr.bf16.mxu0 %v99_v22 }
  0x4c   :  { %766 = vmatprep.mubr.bf16.mxu1 %v101_v25 }
  0x4d   :  { %917 = vmatpush3.bf16.msra.mxu0 %v1004_v54 }
  0x4e   :  { %918 = vmatprep.subr.bf16.mxu0 %v1006_v55  ;;  %939 = vmatpush3.bf16.msra.mxu1 %v1005_v56 }
  0x4f   :  { %940 = vmatprep.subr.bf16.mxu1 %v1007_v57 }
  0x51   :  { %919 = vmatpush3.bf16.msra.mxu0 %v1008_v58 }
  0x52   :  { %920 = vmatprep.subr.bf16.mxu0 %v1010_v59  ;;  %941 = vmatpush3.bf16.msra.mxu1 %v1009_v60 }
  0x53   :  { %942 = vmatprep.subr.bf16.mxu1 %v1011_v61 }
  0x55   :  { %921 = vmatpush3.bf16.msra.mxu0 %v1012_v62 }
  0x56   :  { %922 = vmatprep.subr.bf16.mxu0 %v1014_v63  ;;  %943 = vmatpush3.bf16.msra.mxu1 %v1013_v0 }
  0x57   :  { %944 = vmatprep.subr.bf16.mxu1 %v1015_v1 }
  0x59   :  { %923 = vmatpush3.bf16.msra.mxu0 %v1016_v2 }
  0x5a   :  { %924 = vmatprep.subr.bf16.mxu0 %v1018_v3  ;;  %945 = vmatpush3.bf16.msra.mxu1 %v1017_v4 }
  0x5b   :  { %946 = vmatprep.subr.bf16.mxu1 %v1019_v5 }
  0x5d   :  { %925 = vmatpush3.bf16.msra.mxu0 %v1020_v6 }
  0x5e   :  { %926 = vmatprep.subr.bf16.mxu0 %v1022_v7  ;;  %947 = vmatpush3.bf16.msra.mxu1 %v1021_v8 }
  0x5f   :  { %948 = vmatprep.subr.bf16.mxu1 %v1023_v9 }
  0x61   :  { %927 = vmatpush3.bf16.msra.mxu0 %v1024_v10 }
  0x62   :  { %928 = vmatprep.subr.bf16.mxu0 %v1026_v11  ;;  %949 = vmatpush3.bf16.msra.mxu1 %v1025_v12 }
  0x63   :  { %950 = vmatprep.subr.bf16.mxu1 %v1027_v13 }
  0x65   :  { %929 = vmatpush3.bf16.msra.mxu0 %v1028_v15 }
  0x66   :  { %951 = vmatpush3.bf16.msra.mxu1 %v1029_v18 }
  0x68   :  { %727 = vmatmul.mubr.bf16.vlgmr.msra.gmra.mrb[4].mxu0 %v98_v21 }
  0x69   :  { %767 = vmatmul.mubr.bf16.vlgmr.msra.gmra.mrb[4].mxu1 %v100_v24 }
 0x11b   :  { %v886_v27 = vpop.f32.mrb[0].mxu0 }
 0x11c   :  { %v887_v28 = vpop.f32.mrb[1].mxu0  ;;  %v908_v29 = vpop.f32.mrb[0].mxu1 }
 0x11d   :  { %v888_v30 = vadd.f32 %v887_v28, %v886_v27  ;;  %v889_v31 = vpop.f32.mrb[2].mxu0  ;;  %v909_v32 = vpop.f32.mrb[1].mxu1 }
 0x11e   :  { %v890_v33 = vpop.f32.mrb[3].mxu0  ;;  %v910_v34 = vadd.f32 %v909_v32, %v908_v29  ;;  %v911_v35 = vpop.f32.mrb[2].mxu1 }
 0x11f   :  { %v912_v36 = vpop.f32.mrb[3].mxu1 }
 0x120   :  { %v689_v37 = vadd.f32 %v910_v34, %v888_v30 }
 0x13b   :  { %v930_v38 = vpop.f32.mrb[4].mxu0 }
 0x13c   :  { %v931_v39 = vpop.f32.mrb[5].mxu0  ;;  %v952_v40 = vpop.f32.mrb[4].mxu1 }
 0x13d   :  { %v932_v41 = vadd.f32 %v931_v39, %v930_v38  ;;  %v933_v42 = vpop.f32.mrb[6].mxu0  ;;  %v953_v43 = vpop.f32.mrb[5].mxu1 }
 0x13e   :  { %v934_v44 = vpop.f32.mrb[7].mxu0  ;;  %v954_v46 = vadd.f32 %v953_v43, %v952_v40  ;;  %v955_v47 = vpop.f32.mrb[6].mxu1 }
 0x13f   :  { %v729_v45 = vadd.f32 %v932_v41, %v689_v37  ;;  %v956_v49 = vpop.f32.mrb[7].mxu1 }
 0x141   :  { %v769_v50 = vadd.f32 %v954_v46, %v729_v45 }
 0x143   :  { %v774_v51 = vadd.f32 %v769_v50, %v49_v48 }
 0x145   :  { %775 = vst [vmem:[#allocation2] sm:$0x3] %v774_v51 }
 0x14c   :  { %v779_v53 = vld [vmem:[#allocation2] sm:$0x3] }
 0x14d   :  { %v787_v54 = vadd.f32 %v869_v52, %v779_v53 }
 0x14f   :  { %788 = vst [vmem:[#allocation8] sm:$0x3] %v787_v54 }
 0x150   :  { %1086 = shalt.err (!%p1083_p6)
}
 0x151   :  { %s1087_s16 = scalar_lea.hbm %s1185_s3, 32 }
 0x152   :  { %p1088_p7 = scmp.ne.s32.totalorder %s1185_s3, %s1087_s16  ;;  %p1091_p8 = scmp.lt.u32.totalorder %s1087_s16, %s1185_s3 }
 0x154   :  { %p1093_p9 = pnand %p1091_p8, %p1088_p7 }
 0x156   :  { %1096 = shalt.err (!%p1093_p9)
}
 0x157   :  { %798 = dma.vmem_to_hbm [thread:$0]  %s796_s12, 32, %s1185_s3, [#allocation5]  }
 0x158   :  { %1101 = dma.done.wait [#allocation5], 32  }
 0x159   :  { %1102 = vsyncadd [#allocation5], 4294967264 }
 0x15a   :  { %802 = vsyncpa [#allocation4], 1 }
 0x15b   :  { %803 = vsyncpa [#allocation7], 1 }
 0x15c   :  { %804 = vsyncpa [#allocation5], 1 }

</bundles_post_ra>
